<compile_context>
chip_gen: v6e
topology: v6e:2x2x1
jax: 0.10.0
libtpu: 0.0.40
codegen_flags: <defaults>
</compile_context>

<pallas_src>
import math
from functools import partial

import jax
import jax.numpy as jnp
from jax import lax
from jax.experimental import pallas as pl
from jax.experimental.pallas import tpu as pltpu

# ---------------- config (TTTConfig, shrunk but lane-aligned) ----------------
HIDDEN = 256
NUM_HEADS = 2
HEAD_DIM = HIDDEN // NUM_HEADS        # 128 (lane aligned)
MINI_BATCH = 8
ROPE_THETA = 10000.0
TTT_BASE_LR = 1.0
B = 2
L = 16                                 # num_mini_batch = 2, remainder = 0
GATE_PAD = 128                         # gate column padded to one lane tile


# ------------------------------ fused Pallas kernel ---------------------------
def _ttt_fused_kernel(x_ref, w_ref, lrb_ref, cos_ref, sinf_ref,
                      xq_ref, xk_ref, xv_ref, lr_ref, attn_ref,
                      *, head_dim, scale, lr_scale):
    h = pl.program_id(0)
    D = head_dim
    half = D // 2

    xb = x_ref[...]                                       # (L, C) bf16

    # ONE MXU pass per (head, batch): columns are [Q | K | V | gate | 0-pad].
    qkvg = lax.dot_general(xb, w_ref[...], (((1,), (0,)), ((), ())),
                           preferred_element_type=jnp.float32)   # (L, 3D+128) f32

    cos = cos_ref[...]            # (L, D) f32, shared across batch/heads
    sinf = sinf_ref[...]          # (L, D) f32, rotate_half sign folded in

    xq = qkvg[:, 0:D]             # permuted ("halves") feature layout
    xk = qkvg[:, D:2 * D]
    xv = qkvg[:, 2 * D:3 * D]

    # rope in halves layout: x*cos + roll(x, D/2)*sign*sin (sign baked in sinf).
    xq_r = xq * cos + pltpu.roll(xq, shift=half, axis=1) * sinf
    xk_r = xk * cos + pltpu.roll(xk, shift=half, axis=1) * sinf
    xq_ref[...] = xq_r
    xk_ref[...] = xk_r
    xv_ref[...] = xv

    # ttt-lr gate: the weight's pad columns are exact zeros, so a lane reduction
    # over the last 128-lane tile recovers the single gate column exactly
    # (avoids a 1-wide value slice).  lr = base_lr/D * sigmoid(w_h . x_l + b_h).
    s_col = jnp.sum(qkvg[:, 3 * D:3 * D + GATE_PAD], axis=1, keepdims=True)  # (L,1)
    lr_ref[...] = jax.nn.sigmoid(s_col + lrb_ref[h]) * lr_scale
    # TODO(synk): at production HIDDEN, feed the gate in f32 if eta precision
    # downstream demands it (bf16 pre-activation rounding grows with C).

    # attn = softmax((XQ @ XK^T) / sqrt(D)); dot product is invariant under the
    # shared feature permutation, so permuted-space scores are exact.
    sc = lax.dot_general(xq_r.astype(jnp.bfloat16), xk_r.astype(jnp.bfloat16),
                         (((1,), (1,)), ((), ())),
                         preferred_element_type=jnp.float32) * scale        # (L, L)
    m = jnp.max(sc, axis=-1, keepdims=True)
    e = jnp.exp(sc - m)
    attn_ref[...] = e * pl.reciprocal(jnp.sum(e, axis=-1, keepdims=True),
                                      approx=True)


def _ttt_fused(x_bf16, w_fused, lr_b, cos, sin_folded):
    B_, L_, C = x_bf16.shape
    H, D = NUM_HEADS, HEAD_DIM
    NP = w_fused.shape[-1]        # 3*D + 128
    kernel = partial(_ttt_fused_kernel, head_dim=D,
                     scale=1.0 / math.sqrt(D), lr_scale=TTT_BASE_LR / float(D))
    f32 = jnp.float32
    bhld = pl.BlockSpec((None, None, L_, D), lambda h, b: (b, h, 0, 0))
    return pl.pallas_call(
        kernel,
        # b is the innermost (fastest) axis so the per-head weight block stays
        # resident across it; both axes independent -> megacore sharding.
        grid=(H, B_),
        in_specs=[
            pl.BlockSpec((None, L_, C), lambda h, b: (b, 0, 0)),     # x[b] (bf16)
            pl.BlockSpec((None, C, NP), lambda h, b: (h, 0, 0)),     # fused weight, head h
            pl.BlockSpec(memory_space=pltpu.MemorySpace.SMEM),       # ttt_lr bias (H,)
            pl.BlockSpec((L_, D), lambda h, b: (0, 0)),              # shared cos table
            pl.BlockSpec((L_, D), lambda h, b: (0, 0)),              # shared sign-folded sin
        ],
        out_specs=[
            bhld, bhld, bhld,                                        # XQ_perm, XK_perm, XV
            pl.BlockSpec((None, None, L_, 1), lambda h, b: (b, h, 0, 0)),   # ttt_lr column
            pl.BlockSpec((None, None, L_, L_), lambda h, b: (b, h, 0, 0)),  # attn
        ],
        out_shape=[
            jax.ShapeDtypeStruct((B_, H, L_, D), f32),
            jax.ShapeDtypeStruct((B_, H, L_, D), f32),
            jax.ShapeDtypeStruct((B_, H, L_, D), f32),
            jax.ShapeDtypeStruct((B_, H, L_, 1), f32),
            jax.ShapeDtypeStruct((B_, H, L_, L_), f32),
        ],
        compiler_params=pltpu.CompilerParams(
            dimension_semantics=("parallel", "parallel")),
        # TODO(synk): production sizing — tile L into >=256-row M blocks (v6e MXU
        # fill), K-tile C (or stage weights once via manual DMA) and set
        # vmem_limit_bytes for v7x's 64 MiB VMEM, and online-softmax-tile the
        # (L, L) attn block at long sequence lengths.
    )(x_bf16, w_fused, lr_b, cos, sin_folded)


# --------------------------------- JAX glue -----------------------------------
def _fused_qkv_lr_weight(wq, wk, wv, w_lr, num_heads, head_dim):
    """(O,C) torch-Linear weights -> (H, C, 3*D+128) bf16.  permute_qk is folded
    into the Q/K row order (interleaved pairs -> halves) per head; the per-head
    ttt_lr gate weight is appended as one column, zero-padded to a 128-lane tile."""
    C = wq.shape[1]
    H, D = num_heads, head_dim

    def perm_rows(w):   # (H*D, C) -> (H, D, C); row j*D/2+i of head h = orig row 2i+j
        return w.reshape(H, D // 2, 2, C).transpose(0, 2, 1, 3).reshape(H, D, C)

    q = perm_rows(wq)
    k = perm_rows(wk)
    v = wv.reshape(H, D, C)
    g = w_lr.reshape(H, 1, C)
    zpad = jnp.zeros((H, GATE_PAD - 1, C), jnp.float32)
    w = jnp.concatenate([q, k, v, g, zpad], axis=1)        # (H, 3D+128, C)
    return jnp.transpose(w, (0, 2, 1)).astype(jnp.bfloat16)  # (H, C, 3D+128)


def _undo_permute_qk(q, k):
    b, h, l, d = q.shape
    q = q.reshape(b, h, l, 2, d // 2).swapaxes(3, 4).reshape(b, h, l, d)
    k = k.reshape(b, h, l, 2, d // 2).swapaxes(3, 4).reshape(b, h, l, d)
    return q, k


def _permute_qk(q, k):
    b, h, l, d = q.shape
    q = q.reshape(b, h, l, d // 2, 2).swapaxes(3, 4).reshape(b, h, l, d)
    k = k.reshape(b, h, l, d // 2, 2).swapaxes(3, 4).reshape(b, h, l, d)
    return q, k


def _rotate_half(x):
    x1 = x[..., : x.shape[-1] // 2]
    x2 = x[..., x.shape[-1] // 2:]
    return jnp.concatenate([-x2, x1], axis=-1)


def ttt_base_forward(params, hidden_states, position_ids):
    B_, L_, C = hidden_states.shape
    H, D, MB = NUM_HEADS, HEAD_DIM, MINI_BATCH
    NM = L_ // MB
    # TODO(synk): reminder_len branch of forward() not exercised (L % mini_batch == 0 here).

    w_fused = _fused_qkv_lr_weight(params["wq"], params["wk"], params["wv"],
                                   params["ttt_lr_w"], H, D)
    lr_b = params["ttt_lr_b"].reshape(H).astype(jnp.float32)

    # Shared cos / sign-folded sin tables (rotate_half's -/+ sign baked into sin).
    pos = (position_ids % MB).astype(jnp.float32)
    if pos.ndim == 2:
        # TODO(synk): rope tables assumed shared across batch (standard arange
        # position_ids); per-batch-distinct position_ids would need per-batch
        # (B, L, D) cos/sin blocks indexed on the batch grid axis.
        pos = pos[0]
    inv_freq = 1.0 / (ROPE_THETA ** (jnp.arange(0, D, 2, dtype=jnp.float32) / D))
    freqs = pos[:, None] * inv_freq[None, :]                            # (L, D/2)
    cos = jnp.concatenate([jnp.cos(freqs), jnp.cos(freqs)], axis=-1)    # (L, D)
    sin_folded = jnp.concatenate([-jnp.sin(freqs), jnp.sin(freqs)], axis=-1)

    xq_p, xk_p, xv, lr_col, attn = _ttt_fused(
        hidden_states.astype(jnp.bfloat16), w_fused, lr_b, cos, sin_folded)

    # Kernel emits XQ/XK in the rope ("halves") layout; undo the pair interleave.
    XQ, XK = _undo_permute_qk(xq_p, xk_p)
    XV = xv

    # eta assembly (tiny outer product) stays in XLA — kernel only stores lr.
    token_idx = 1.0 / jnp.arange(1, MB + 1, dtype=jnp.float32)
    tok = jnp.maximum(token_idx + params["learnable_token_idx"], 0.0)   # clamp_min(0)
    token_eta = jnp.broadcast_to(tok.reshape(1, 1, 1, MB, 1), (B_, H, NM, MB, 1))
    ttt_lr_eta = lr_col.reshape(B_, H, NM, MB)[:, :, :, None, :]        # (B,H,NM,1,MB)
    eta = token_eta * ttt_lr_eta                                        # (B,H,NM,MB,MB)

    ttt_inputs = {
        "XQ": XQ.reshape(B_, H, NM, MB, D),
        "XK": XK.reshape(B_, H, NM, MB, D),
        "XV": XV.reshape(B_, H, NM, MB, D),
        "eta": eta, "token_eta": token_eta, "ttt_lr_eta": ttt_lr_eta,
    }

    # TODO(synk): TTTBase.ttt() is abstract -> output_hidden_states (ttt, post_norm,
    # optional gate, o_proj) cannot be computed in the base class.
    return attn, ttt_inputs


# ------------------------ pure-JAX f32 reference (for checks) -----------------
def reference_forward(params, hidden_states, position_ids):
    B_, L_, C = hidden_states.shape
    H, D, MB = NUM_HEADS, HEAD_DIM, MINI_BATCH
    NM = L_ // MB
    XQ = hidden_states @ params["wq"].T
    XK = hidden_states @ params["wk"].T
    XV = hidden_states @ params["wv"].T
    XQ = XQ.reshape(B_, L_, H, D).transpose(0, 2, 1, 3)
    XK = XK.reshape(B_, L_, H, D).transpose(0, 2, 1, 3)
    XV = XV.reshape(B_, L_, H, D).transpose(0, 2, 1, 3)

    pos = (position_ids % MB).astype(jnp.float32)
    inv_freq = 1.0 / (ROPE_THETA ** (jnp.arange(0, D, 2, dtype=jnp.float32) / D))
    freqs = pos[:, :, None] * inv_freq[None, None, :]
    emb = jnp.concatenate([freqs, freqs], axis=-1)
    cos = jnp.cos(emb)[:, None, :, :]
    sin = jnp.sin(emb)[:, None, :, :]
    q, k = _permute_qk(XQ, XK)
    q = q * cos + _rotate_half(q) * sin
    k = k * cos + _rotate_half(k) * sin
    XQ, XK = _undo_permute_qk(q, k)

    X = hidden_states.reshape(B_, NM, MB, C)
    ttt_lr = jnp.einsum("bnkc,hdc->bhnkd", X, params["ttt_lr_w"]) \
        + params["ttt_lr_b"].reshape(1, -1, 1, 1, 1)
    ttt_lr = jax.nn.sigmoid(ttt_lr).transpose(0, 1, 2, 4, 3)
    ttt_lr_eta = TTT_BASE_LR * ttt_lr / D
    token_idx = 1.0 / jnp.arange(1, MB + 1, dtype=jnp.float32)
    tok = jnp.maximum(token_idx + params["learnable_token_idx"], 0.0)
    token_eta = jnp.broadcast_to(tok.reshape(1, 1, 1, MB, 1), (B_, H, NM, MB, 1))
    eta = token_eta * ttt_lr_eta

    attn = jax.nn.softmax(
        jnp.einsum("bhqd,bhkd->bhqk", XQ / math.sqrt(D), XK), axis=-1)
    ttt_inputs = {
        "XQ": XQ.reshape(B_, H, NM, MB, D),
        "XK": XK.reshape(B_, H, NM, MB, D),
        "XV": XV.reshape(B_, H, NM, MB, D),
        "eta": eta, "token_eta": token_eta, "ttt_lr_eta": ttt_lr_eta,
    }
    return attn, ttt_inputs


# ------------------------------- params init ----------------------------------
def init_params(key):
    ks = jax.random.split(key, 5)
    bound = 1.0 / math.sqrt(HIDDEN)
    u = lambda k, shape: jax.random.uniform(k, shape, jnp.float32, -bound, bound)
    return dict(
        wq=u(ks[0], (HIDDEN, HIDDEN)),
        wk=u(ks[1], (HIDDEN, HIDDEN)),
        wv=u(ks[2], (HIDDEN, HIDDEN)),
        wo=u(ks[3], (HIDDEN, HIDDEN)),                         # o_proj (unused: ttt abstract)
        ttt_lr_w=0.02 * jax.random.normal(ks[4], (NUM_HEADS, 1, HIDDEN), jnp.float32),
        ttt_lr_b=jnp.zeros((NUM_HEADS, 1), jnp.float32),
        learnable_token_idx=jnp.zeros((MINI_BATCH,), jnp.float32),
        ttt_norm_weight=jnp.ones((NUM_HEADS, HEAD_DIM), jnp.float32),   # used by ttt() subclasses
        ttt_norm_bias=jnp.zeros((NUM_HEADS, HEAD_DIM), jnp.float32),
        post_norm_weight=jnp.ones((HIDDEN,), jnp.float32),              # unused: ttt abstract
        post_norm_bias=jnp.zeros((HIDDEN,), jnp.float32),
    )


if __name__ == "__main__":
    key = jax.random.PRNGKey(0)
    pk, hk = jax.random.split(key)
    params = init_params(pk)
    hidden_states = jax.random.normal(hk, (B, L, HIDDEN), dtype=jnp.float32)
    position_ids = jnp.broadcast_to(jnp.arange(L, dtype=jnp.int32)[None, :], (B, L))

    attn, ttt_inputs = jax.jit(ttt_base_forward)(params, hidden_states, position_ids)
    jax.block_until_ready((attn, ttt_inputs))

    NM = L // MINI_BATCH
    assert attn.shape == (B, NUM_HEADS, L, L)
    assert ttt_inputs["eta"].shape == (B, NUM_HEADS, NM, MINI_BATCH, MINI_BATCH)
    assert ttt_inputs["XQ"].shape == (B, NUM_HEADS, NM, MINI_BATCH, HEAD_DIM)
    assert ttt_inputs["ttt_lr_eta"].shape == (B, NUM_HEADS, NM, 1, MINI_BATCH)

    # softmax rows must sum to ~1 (approx-reciprocal denominator)
    row_sums = jnp.sum(attn, axis=-1)
    assert bool(jnp.all(jnp.abs(row_sums - 1.0) < 5e-3))

    # numerical check vs a pure-JAX f32 reference (bf16 MXU feeds => loose tolerances)
    attn_ref, ref_inputs = reference_forward(params, hidden_states, position_ids)
    assert bool(jnp.allclose(attn, attn_ref, atol=1e-2, rtol=0.0)), "attn mismatch"
    for name, tol in (("XQ", 3e-2), ("XK", 3e-2), ("XV", 3e-2),
                      ("eta", 1e-3), ("ttt_lr_eta", 1e-3), ("token_eta", 1e-5)):
        ok = bool(jnp.allclose(ttt_inputs[name], ref_inputs[name], atol=tol, rtol=0.0))
        assert ok, f"{name} mismatch"

    print("KERNEL_OK")
</pallas_src>

<mosaic_0001>
module attributes {stable_mosaic.version = 11 : i64} {
  func.func @_ttt_fused_kernel(%arg0: i32, %arg1: i32, %arg2: memref<1x16x256xbf16, #tpu.memory_space<vmem>>, %arg3: memref<1x256x512xbf16, #tpu.memory_space<vmem>>, %arg4: memref<2xf32, #tpu.memory_space<smem>>, %arg5: memref<16x128xf32, #tpu.memory_space<vmem>>, %arg6: memref<16x128xf32, #tpu.memory_space<vmem>>, %arg7: memref<1x1x16x128xf32, #tpu.memory_space<vmem>>, %arg8: memref<1x1x16x128xf32, #tpu.memory_space<vmem>>, %arg9: memref<1x1x16x128xf32, #tpu.memory_space<vmem>>, %arg10: memref<1x1x16x1xf32, #tpu.memory_space<vmem>>, %arg11: memref<1x1x16x16xf32, #tpu.memory_space<vmem>>) attributes {dimension_semantics = [#tpu.dimension_semantics<parallel>, #tpu.dimension_semantics<parallel>], iteration_bounds = array<i64: 2, 2>, scalar_prefetch = 0 : i64, scratch_operands = 0 : i64, tpu.core_type = #tpu.core_type<tc>, window_params = [{transform_indices = @transform_0, window_bounds = array<i64: 1, 16, 256>}, {transform_indices = @transform_1, window_bounds = array<i64: 1, 256, 512>}, {transform_indices = @transform_2, window_bounds = array<i64: 2>}, {pipeline_mode = #tpu.pipeline_mode<synchronous>, transform_indices = @transform_3, window_bounds = array<i64: 16, 128>}, {pipeline_mode = #tpu.pipeline_mode<synchronous>, transform_indices = @transform_4, window_bounds = array<i64: 16, 128>}, {transform_indices = @transform_5, window_bounds = array<i64: 1, 1, 16, 128>}, {transform_indices = @transform_6, window_bounds = array<i64: 1, 1, 16, 128>}, {transform_indices = @transform_7, window_bounds = array<i64: 1, 1, 16, 128>}, {transform_indices = @transform_8, window_bounds = array<i64: 1, 1, 16, 1>}, {transform_indices = @transform_9, window_bounds = array<i64: 1, 1, 16, 16>}]} {
    %c0 = arith.constant 0 : index
    %c0_0 = arith.constant 0 : index
    %c0_1 = arith.constant 0 : index
    %0 = vector.load %arg2[%c0, %c0_0, %c0_1] : memref<1x16x256xbf16, #tpu.memory_space<vmem>>, vector<1x16x256xbf16>
    %1 = vector.shape_cast %0 : vector<1x16x256xbf16> to vector<16x256xbf16>
    %c0_2 = arith.constant 0 : index
    %c0_3 = arith.constant 0 : index
    %c0_4 = arith.constant 0 : index
    %2 = vector.load %arg3[%c0_2, %c0_3, %c0_4] : memref<1x256x512xbf16, #tpu.memory_space<vmem>>, vector<1x256x512xbf16>
    %3 = vector.shape_cast %2 : vector<1x256x512xbf16> to vector<256x512xbf16>
    %cst = arith.constant dense<0.000000e+00> : vector<16x512xf32>
    %4 = tpu.matmul %1, %3, %cst {dimension_numbers = #tpu.dot_dimension_numbers<[1], [0], [0], [1], [0, 0, 1, 1], [], []>} : vector<16x256xbf16>, vector<256x512xbf16>, vector<16x512xf32> -> vector<16x512xf32>
    %c0_5 = arith.constant 0 : index
    %c0_6 = arith.constant 0 : index
    %5 = vector.load %arg5[%c0_5, %c0_6] : memref<16x128xf32, #tpu.memory_space<vmem>>, vector<16x128xf32>
    %c0_7 = arith.constant 0 : index
    %c0_8 = arith.constant 0 : index
    %6 = vector.load %arg6[%c0_7, %c0_8] : memref<16x128xf32, #tpu.memory_space<vmem>>, vector<16x128xf32>
    %7 = vector.extract_strided_slice %4 {offsets = [0, 0], sizes = [16, 128], strides = [1, 1]} : vector<16x512xf32> to vector<16x128xf32>
    %8 = vector.extract_strided_slice %4 {offsets = [0, 128], sizes = [16, 128], strides = [1, 1]} : vector<16x512xf32> to vector<16x128xf32>
    %9 = vector.extract_strided_slice %4 {offsets = [0, 256], sizes = [16, 128], strides = [1, 1]} : vector<16x512xf32> to vector<16x128xf32>
    %10 = arith.mulf %7, %5 : vector<16x128xf32>
    %c64_i32 = arith.constant 64 : i32
    %11 = tpu.dynamic_rotate %7 by %c64_i32 dim 1 : vector<16x128xf32>, i32 -> vector<16x128xf32>
    %12 = arith.mulf %11, %6 : vector<16x128xf32>
    %13 = arith.addf %10, %12 : vector<16x128xf32>
    %14 = arith.mulf %8, %5 : vector<16x128xf32>
    %c64_i32_9 = arith.constant 64 : i32
    %15 = tpu.dynamic_rotate %8 by %c64_i32_9 dim 1 : vector<16x128xf32>, i32 -> vector<16x128xf32>
    %16 = arith.mulf %15, %6 : vector<16x128xf32>
    %17 = arith.addf %14, %16 : vector<16x128xf32>
    %c0_10 = arith.constant 0 : index
    %c0_11 = arith.constant 0 : index
    %c0_12 = arith.constant 0 : index
    %c0_13 = arith.constant 0 : index
    %18 = vector.load %arg7[%c0_10, %c0_11, %c0_12, %c0_13] : memref<1x1x16x128xf32, #tpu.memory_space<vmem>>, vector<1x1x16x128xf32>
    %19 = vector.shape_cast %18 : vector<1x1x16x128xf32> to vector<16x128xf32>
    %20 = vector.shape_cast %13 : vector<16x128xf32> to vector<1x1x16x128xf32>
    tpu.vector_store %arg7[%c0_10, %c0_11, %c0_12, %c0_13], %20 {strides = array<i32>} : memref<1x1x16x128xf32, #tpu.memory_space<vmem>>, vector<1x1x16x128xf32>,
    %c0_14 = arith.constant 0 : index
    %c0_15 = arith.constant 0 : index
    %c0_16 = arith.constant 0 : index
    %c0_17 = arith.constant 0 : index
    %21 = vector.load %arg8[%c0_14, %c0_15, %c0_16, %c0_17] : memref<1x1x16x128xf32, #tpu.memory_space<vmem>>, vector<1x1x16x128xf32>
    %22 = vector.shape_cast %21 : vector<1x1x16x128xf32> to vector<16x128xf32>
    %23 = vector.shape_cast %17 : vector<16x128xf32> to vector<1x1x16x128xf32>
    tpu.vector_store %arg8[%c0_14, %c0_15, %c0_16, %c0_17], %23 {strides = array<i32>} : memref<1x1x16x128xf32, #tpu.memory_space<vmem>>, vector<1x1x16x128xf32>,
    %c0_18 = arith.constant 0 : index
    %c0_19 = arith.constant 0 : index
    %c0_20 = arith.constant 0 : index
    %c0_21 = arith.constant 0 : index
    %24 = vector.load %arg9[%c0_18, %c0_19, %c0_20, %c0_21] : memref<1x1x16x128xf32, #tpu.memory_space<vmem>>, vector<1x1x16x128xf32>
    %25 = vector.shape_cast %24 : vector<1x1x16x128xf32> to vector<16x128xf32>
    %26 = vector.shape_cast %9 : vector<16x128xf32> to vector<1x1x16x128xf32>
    tpu.vector_store %arg9[%c0_18, %c0_19, %c0_20, %c0_21], %26 {strides = array<i32>} : memref<1x1x16x128xf32, #tpu.memory_space<vmem>>, vector<1x1x16x128xf32>,
    %27 = vector.extract_strided_slice %4 {offsets = [0, 384], sizes = [16, 128], strides = [1, 1]} : vector<16x512xf32> to vector<16x128xf32>
    %cst_22 = arith.constant dense<0.000000e+00> : vector<16xf32>
    %28 = vector.multi_reduction <add>, %27, %cst_22 [1] : vector<16x128xf32> to vector<16xf32>
    %29 = vector.shape_cast %28 : vector<16xf32> to vector<16x1xf32>
    %30 = arith.index_cast %arg0 : i32 to index
    %31 = memref.load %arg4[%30] : memref<2xf32, #tpu.memory_space<smem>>
    %32 = vector.broadcast %31 : f32 to vector<16x1xf32>
    %33 = arith.addf %29, %32 : vector<16x1xf32>
    %34 = arith.negf %33 : vector<16x1xf32>
    %35 = math.exp %34 : vector<16x1xf32>
    %cst_23 = arith.constant 1.000000e+00 : f32
    %36 = vector.broadcast %cst_23 : f32 to vector<16x1xf32>
    %37 = arith.addf %36, %35 : vector<16x1xf32>
    %38 = arith.divf %36, %37 : vector<16x1xf32>
    %cst_24 = arith.constant 7.812500e-03 : f32
    %39 = vector.broadcast %cst_24 : f32 to vector<16x1xf32>
    %40 = arith.mulf %38, %39 : vector<16x1xf32>
    %c0_25 = arith.constant 0 : index
    %c0_26 = arith.constant 0 : index
    %c0_27 = arith.constant 0 : index
    %c0_28 = arith.constant 0 : index
    %41 = vector.load %arg10[%c0_25, %c0_26, %c0_27, %c0_28] : memref<1x1x16x1xf32, #tpu.memory_space<vmem>>, vector<1x1x16x1xf32>
    %42 = vector.shape_cast %41 : vector<1x1x16x1xf32> to vector<16x1xf32>
    %43 = vector.shape_cast %40 : vector<16x1xf32> to vector<1x1x16x1xf32>
    tpu.vector_store %arg10[%c0_25, %c0_26, %c0_27, %c0_28], %43 {strides = array<i32>} : memref<1x1x16x1xf32, #tpu.memory_space<vmem>>, vector<1x1x16x1xf32>,
    %44 = arith.truncf %13 : vector<16x128xf32> to vector<16x128xbf16>
    %45 = arith.truncf %17 : vector<16x128xf32> to vector<16x128xbf16>
    %cst_29 = arith.constant dense<0.000000e+00> : vector<16x16xf32>
    %46 = tpu.matmul %44, %45, %cst_29 {dimension_numbers = #tpu.dot_dimension_numbers<[1], [1], [0], [0], [0, 0, 1, 0], [], []>} : vector<16x128xbf16>, vector<16x128xbf16>, vector<16x16xf32> -> vector<16x16xf32>
    %cst_30 = arith.constant 0.0883883461 : f32
    %47 = vector.broadcast %cst_30 : f32 to vector<16x16xf32>
    %48 = arith.mulf %46, %47 : vector<16x16xf32>
    %cst_31 = arith.constant dense<0xFF800000> : vector<16xf32>
    %49 = vector.multi_reduction <maximumf>, %48, %cst_31 [1] : vector<16x16xf32> to vector<16xf32>
    %50 = vector.shape_cast %49 : vector<16xf32> to vector<16x1xf32>
    %51 = vector.broadcast %50 : vector<16x1xf32> to vector<16x16xf32>
    %52 = arith.subf %48, %51 : vector<16x16xf32>
    %53 = math.exp %52 : vector<16x16xf32>
    %cst_32 = arith.constant dense<0.000000e+00> : vector<16xf32>
    %54 = vector.multi_reduction <add>, %53, %cst_32 [1] : vector<16x16xf32> to vector<16xf32>
    %55 = vector.shape_cast %54 : vector<16xf32> to vector<16x1xf32>
    %56 = tpu.reciprocal %55 {approx = true} : vector<16x1xf32> -> vector<16x1xf32>
    %57 = vector.broadcast %56 : vector<16x1xf32> to vector<16x16xf32>
    %58 = arith.mulf %53, %57 : vector<16x16xf32>
    %c0_33 = arith.constant 0 : index
    %c0_34 = arith.constant 0 : index
    %c0_35 = arith.constant 0 : index
    %c0_36 = arith.constant 0 : index
    %59 = vector.load %arg11[%c0_33, %c0_34, %c0_35, %c0_36] : memref<1x1x16x16xf32, #tpu.memory_space<vmem>>, vector<1x1x16x16xf32>
    %60 = vector.shape_cast %59 : vector<1x1x16x16xf32> to vector<16x16xf32>
    %61 = vector.shape_cast %58 : vector<16x16xf32> to vector<1x1x16x16xf32>
    tpu.vector_store %arg11[%c0_33, %c0_34, %c0_35, %c0_36], %61 {strides = array<i32>} : memref<1x1x16x16xf32, #tpu.memory_space<vmem>>, vector<1x1x16x16xf32>,
    return
  }
  func.func @transform_0(%arg0: i32, %arg1: i32) -> (i32, i32, i32) {
    %c0_i32 = arith.constant 0 : i32
    %c0_i32_0 = arith.constant 0 : i32
    %c0_i32_1 = arith.constant 0 : i32
    return %arg1, %c0_i32, %c0_i32_0 : i32, i32, i32
  }
  func.func @transform_1(%arg0: i32, %arg1: i32) -> (i32, i32, i32) {
    %c0_i32 = arith.constant 0 : i32
    %c0_i32_0 = arith.constant 0 : i32
    %c0_i32_1 = arith.constant 0 : i32
    return %arg0, %c0_i32, %c0_i32_0 : i32, i32, i32
  }
  func.func @transform_2(%arg0: i32, %arg1: i32) -> i32 {
    %c0_i32 = arith.constant 0 : i32
    %c0_i32_0 = arith.constant 0 : i32
    return %c0_i32 : i32
  }
  func.func @transform_3(%arg0: i32, %arg1: i32) -> (i32, i32) {
    %c0_i32 = arith.constant 0 : i32
    %c0_i32_0 = arith.constant 0 : i32
    %c0_i32_1 = arith.constant 0 : i32
    return %c0_i32, %c0_i32_0 : i32, i32
  }
  func.func @transform_4(%arg0: i32, %arg1: i32) -> (i32, i32) {
    %c0_i32 = arith.constant 0 : i32
    %c0_i32_0 = arith.constant 0 : i32
    %c0_i32_1 = arith.constant 0 : i32
    return %c0_i32, %c0_i32_0 : i32, i32
  }
  func.func @transform_5(%arg0: i32, %arg1: i32) -> (i32, i32, i32, i32) {
    %c0_i32 = arith.constant 0 : i32
    %c0_i32_0 = arith.constant 0 : i32
    %c0_i32_1 = arith.constant 0 : i32
    return %arg1, %arg0, %c0_i32, %c0_i32_0 : i32, i32, i32, i32
  }
  func.func @transform_6(%arg0: i32, %arg1: i32) -> (i32, i32, i32, i32) {
    %c0_i32 = arith.constant 0 : i32
    %c0_i32_0 = arith.constant 0 : i32
    %c0_i32_1 = arith.constant 0 : i32
    return %arg1, %arg0, %c0_i32, %c0_i32_0 : i32, i32, i32, i32
  }
  func.func @transform_7(%arg0: i32, %arg1: i32) -> (i32, i32, i32, i32) {
    %c0_i32 = arith.constant 0 : i32
    %c0_i32_0 = arith.constant 0 : i32
    %c0_i32_1 = arith.constant 0 : i32
    return %arg1, %arg0, %c0_i32, %c0_i32_0 : i32, i32, i32, i32
  }
  func.func @transform_8(%arg0: i32, %arg1: i32) -> (i32, i32, i32, i32) {
    %c0_i32 = arith.constant 0 : i32
    %c0_i32_0 = arith.constant 0 : i32
    %c0_i32_1 = arith.constant 0 : i32
    return %arg1, %arg0, %c0_i32, %c0_i32_0 : i32, i32, i32, i32
  }
  func.func @transform_9(%arg0: i32, %arg1: i32) -> (i32, i32, i32, i32) {
    %c0_i32 = arith.constant 0 : i32
    %c0_i32_0 = arith.constant 0 : i32
    %c0_i32_1 = arith.constant 0 : i32
    return %arg1, %arg0, %c0_i32, %c0_i32_0 : i32, i32, i32, i32
  }
}

</mosaic_0001>

<bundles_post_ra>
// kernel: mul.23
= control target key start
LH: loop header
LB: loop body
LE: loop exit
PB: predicated region body
PF: predicated region fallthrough
CT: control target
= control target key end

     0   :  { %vm12_vm0 = vcmask 64512   ;;  %s89_s0 = inlined_call_operand.vmem [shape: f32[2,2,16], index: 0, kind: input, shape index: {}]   ;;  %s90_s1 = inlined_call_operand.vmem [shape: f32[2,2,2,8], index: 1, kind: output, shape index: {}]  }
   0x1   :  { %v55_v0 = vld [vmem:[%s89_s0 + $0x2] sm:$0x3]  ;;  %v9_v1 = vld [vmem:[%s89_s0] sm:$0x3]  ;;  %s60_s0 = smov 120  }
   0x2   :  { %8 = vst [vmem:[#allocation1 + $0x8] sm:$0x3] %v55_v0  ;;  %10 = vst [vmem:[#allocation1] sm:$0x3] %v9_v1 }
   0x9   :  { %v19_v2 = vld.sshfl [vmem:[#allocation1] sm:$0xff pattern:$0x99999810]  }
   0xa   :  { %v11_v3 = vld [vmem:[#allocation1] sm:$0x3]   ;;  %20 = vrot.lane.b32.xlu0 %v19_v2, %s60_s0  ;;  %v15_v4 = vld [vmem:[#allocation1 + $0x8] sm:$0x3]  }
   0xb   :  { %13 = vst.msk [vmem:[#allocation0] ss:$8 sm:$0x3] %vm12_vm0, %v11_v3   ;;  %18 = vst.msk [vmem:[#allocation0 + $0x10] ss:$8 sm:$0x3] %vm12_vm0, %v15_v4  }
  0x7c   :  { %v21_v5 = vpop.permute.xlu0 %20  }
  0x7d   :  { %24 = vst.msk [vmem:[#allocation0 + $0x1] ss:$8 sm:$0xf] %vm12_vm0, %v21_v5  }
  0x84   :  { %v29_v6 = vld [vmem:[#allocation0] sm:$0x3]  ;;  %v34_v7 = vld [vmem:[#allocation0 + $0x8] sm:$0x3]  ;;  %v40_v8 = vld [vmem:[#allocation0 + $0x10] sm:$0x3] }
  0x85   :  { %32 = vst [vmem:[%s90_s1] sm:$0x3] %v29_v6  ;;  %56 = vst [vmem:[%s90_s1 + $0x2] sm:$0x3] %v34_v7  ;;  %v47_v9 = vld [vmem:[#allocation0 + $0x18] sm:$0x3] }
  0x86   :  { %57 = vst [vmem:[%s90_s1 + $0x4] sm:$0x3] %v40_v8  ;;  %58 = vst [vmem:[%s90_s1 + $0x6] sm:$0x3] %v47_v9 }

// kernel: ttt_base_forward.1
= control target key start
LH: loop header
LB: loop body
LE: loop exit
PB: predicated region body
PF: predicated region fallthrough
CT: control target
= control target key end

     0   :  { %s2264_s0 = inlined_call_operand.vmem [shape: bf16[2,16,256], index: 0, kind: input, shape index: {}]   ;;  %s2265_s1 = inlined_call_operand.vmem [shape: bf16[2,256,512], index: 1, kind: input, shape index: {}]   ;;  %s2266_s2 = inlined_call_operand.vmem [shape: f32[2], index: 2, kind: input, shape index: {}]   ;;  %s2267_s3 = inlined_call_operand.vmem [shape: f32[16,128], index: 3, kind: input, shape index: {}]   ;;  %s2268_s4 = inlined_call_operand.vmem [shape: f32[16,128], index: 4, kind: input, shape index: {}]   ;;  %s2269_s5 = inlined_call_operand.vmem [shape: f32[2,2,16,128], index: 5, kind: output, shape index: {0}]   ;;  %s2270_s6 = inlined_call_operand.vmem [shape: f32[2,2,16,128], index: 6, kind: output, shape index: {1}]   ;;  %s2271_s7 = inlined_call_operand.hbm [shape: f32[2,2,16,128], index: 7, kind: output, shape index: {2}]   ;;  %s2272_s8 = inlined_call_operand.vmem [shape: f32[2,2,16,1], index: 8, kind: output, shape index: {3}]   ;;  %s2273_s9 = inlined_call_operand.hbm [shape: f32[2,2,16,16], index: 9, kind: output, shape index: {4}]  }
   0x1   :  { %2280 = sst [smem:[#allocation13_spill]] %s2264_s0 }
   0x2   :  { %15 = vsyncpa [#allocation4], 0 }
   0x3   :  { %16 = vsyncpa [#allocation3], 0 }
   0x4   :  { %18 = vsyncpa [#allocation3 + $0x1], 0 }
   0x5   :  { %19 = vsyncpa [#allocation7], 0 }
   0x6   :  { %21 = vsyncpa [#allocation7 + $0x1], 0  ;;  %s1917_s30 = smov 0   ;;  %s1919_s10 = smov 0  }
   0x7   :  { %s1921_s11 = smov 0   ;;  %s1923_s12 = smov 0  }
   0x8   :  { %s1925_s13 = smov 0   ;;  %s1927_s14 = smov 0  }
   0x9   :  { %s1929_s15 = smov 0   ;;  %s1931_s16 = smov 0  }
   0xa LB: > { %2281 = sst [smem:[#allocation11_spill]] %s1849_s14  ;;  %s1399_s17 = sadd.s32 4294967295, %s1857_s16   ;;  %s1857_s16 = sphi %s1931_s16, %s27_s16   ;;  %s1853_s15 = sphi %s1929_s15, %s2301_s15   ;;  %s1849_s14 = sphi %s1927_s14, %s2300_s14   ;;  %s1845_s13 = sphi %s1925_s13, %s2299_s13   ;;  %s1841_s12 = sphi %s1923_s12, %s2294_s12   ;;  %s1837_s11 = sphi %s1921_s11, %s2298_s11   ;;  %s1833_s10 = sphi %s1919_s10, %s2297_s10   ;;  %s1829_s30 = sphi %s1917_s30, %s2296_s30  }
   0xb   : > { %s1400_s18 = sadd.s32 4294967294, %s1857_s16   ;;  %s36_s19 = sadd.s32 1, %s1849_s14 }
   0xc   : > { %s39_s20 = sadd.s32 1, %s1853_s15  ;;  %p37_p0 = scmp.ge.s32.totalorder %s36_s19, 2 }
   0xd   : > { %s219_s21 = sadd.s32 1, %s1837_s11  ;;  %p229_p1 = scmp.ne.s32.totalorder %s1837_s11, %s1833_s10 }
   0xe   : > { %p230_p2 = scmp.eq.s32.totalorder %s1399_s17, 3  ;;  %s2303_s19 = smov (%p37_p0, %s36_s19), 0 }
   0xf   : > { %2282 = sst [smem:[#allocation12_spill]] %s2303_s19  ;;  %s2305_s20 = smov (!%p37_p0, %s39_s20), %s1853_s15 }
  0x10   : > { %s214_s22 = ssub.s32 %s1849_s14, %s2303_s19  ;;  %p1969_p3 = por %p230_p2, %p229_p1 }
  0x11   : > { %p41_p4 = scmp.ge.s32.totalorder %s2305_s20, 2  ;;  %p235_p5 = scmp.ne.s32.totalorder %s1833_s10, %s1829_s30 }
  0x12   : > { %p236_p6 = scmp.eq.s32.totalorder %s1400_s18, 3  ;;  %p1401_p7 = scmp.ge.s32.totalorder %s1857_s16, 1 }
  0x13   : > { %s2307_s20 = smov (%p41_p4, %s2305_s20), 0  ;;  %p299_p9 = scmp.lt.s32.totalorder %s1857_s16, 5 }
  0x14   : > { %p1978_p8 = por %p236_p6, %p235_p5  ;;  %s215_s25 = ssub.s32 %s1853_s15, %s2307_s20 }
  0x15   : > { %s216_s26 = sor.u32 %s215_s25, %s214_s22  ;;  %p1985_p10 = pnand %p1401_p7, %p299_p9 }
  0x16   : > { %s2284_s24 = scalar_select %p1978_p8, 1, 0 }
  0x17   : > { %p217_p11 = scmp.eq.s32.totalorder %s216_s26, 0  ;;  %p1989_p12 = scmp.eq.s32.totalorder %s1399_s17, 0 }
  0x18   : > { %p1517_p13 = pneg %p1985_p10  ;;  %s312_s19 = sshll.u32 %s2266_s2, 4  ;;  %s313_s19 = int_to_ptr.vmem [resolvable:$true] %s312_s19 }
  0x19   : > { %s1999_s14 = scalar_select %p217_p11, %s1837_s11, %s219_s21  }
  0x1a   : > { %p1518_p0 = pnand %p1989_p12, %p1517_p13  ;;  %s1716_s22 = scalar_lea.vmem %s313_s19, 16 }
  0x1b   : > { %p1717_p1 = scmp.ne.s32.totalorder %s313_s19, %s1716_s22  ;;  %p1724_p6 = scmp.lt.s32.totalorder %s313_s19, %s313_s19 }
  0x1c   : > { %p1718_p2 = pneg %p1518_p0  ;;  %p1725_p7 = scmp.lt.s32.totalorder %s1716_s22, %s1716_s22 }
  0x1e   : > { %p1719_p4 = pnand %p1718_p2, %p1717_p1  ;;  %p1726_p9 = por %p1725_p7, %p1724_p6 }
  0x20   : > { %p1720_p5 = pneg %p1719_p4 }
  0x22   : > { %p1727_p8 = pnand %p1726_p9, %p1720_p5 }
  0x24   : > { %1730 = shalt.err (!%p1727_p8)
}
  0x25   : > { %s1859_s17 = smov [#allocation2]   ;;  %347 = sbr.rel (%p1985_p10) target bundleno = 968 (0x3c8), region = 40 }
  0x26   : > { %1520 = dma.vmem_to_smem (!%p1518_p0), %s313_s19, 16, %s1859_s17, [#allocation4]  }
  0x2a   : > { %1816 = dma.done.wait (%p1989_p12), [#allocation4], 16  }
  0x2b   : > { %1818 = vsyncadd (%p1989_p12), [#allocation4], 4294967280 }
  0x2c   : > { %353 = sfence }
  0x2d   : > { %p426_p11 = scmp.lt.s32.totalorder %s1845_s13, 1  ;;  %p421_p8 = scmp.lt.s32.totalorder %s1841_s12, 1  ;;  %v1860_v34 = vmov 0.0   ;;  %vm1862_vm0 = vmmov 0   ;;  %vm1041_vm1 = vcmask 130048   ;;  %vm993_vm2 = vcmask 7168  }
  0x2e   : > { %s2287_s0 = sld [smem:[#allocation13_spill]] }
  0x2f   : > { %s2011_s21 = scalar_select %p426_p11, %s1845_s13, 1 }
  0x30   : > { %s2030_s28 = scalar_select %p421_p8, %s1841_s12, 1 }
  0x31   : > { %s1500_s25 = sshll.u32 %s2011_s21, 9  ;;  %s1412_s19 = sshll.u32 %s2011_s21, 1 }
  0x32   : > { %s2017_s27 = scalar_lea.vmem %s2265_s1, %s1500_s25  ;;  %s1499_s29 = sshll.u32 %s2030_s28, 4 }
  0x33   : > { %v1601_v0 = vld [vmem:[%s2017_s27 + $0xe4] ss:$16 sps:$4 sm:$0xff]   ;;  %v1603_v1 = vld [vmem:[%s2017_s27 + $0xe0] ss:$16 sps:$4 sm:$0xff]   ;;  %s1861_s25 = smov 64   ;;  %s1413_s26 = sshll.u32 %s2030_s28, 2 }
  0x34   : > { %855 = vmatprep.subr.bf16.mxu0 %v1601_v0  ;;  %v1604_v2 = vld [vmem:[%s2017_s27 + $0xc4] ss:$16 sps:$4 sm:$0xff]   ;;  %v1606_v3 = vld [vmem:[%s2017_s27 + $0xc0] ss:$16 sps:$4 sm:$0xff]   ;;  %s2039_s17 = scalar_lea.vmem %s2287_s0, %s1499_s29  ;;  %v1652_v39 = vld [vmem:[%s2017_s27 + $0xec] ss:$16 sps:$4 sm:$0xff]   ;;  %s437_s29 = sadd.s32 %s1413_s26, %s1412_s19 }
  0x35   : > { %856 = vmatpush1.bf16.msra.mxu0 %v1603_v1  ;;  %v1607_v4 = vld [vmem:[%s2017_s27 + $0xa4] ss:$16 sps:$4 sm:$0xff]   ;;  %v1609_v5 = vld [vmem:[%s2017_s27 + $0xa0] ss:$16 sps:$4 sm:$0xff]   ;;  %v1654_v40 = vld [vmem:[%s2017_s27 + $0xe8] ss:$16 sps:$4 sm:$0xff]   ;;  %898 = vmatprep.subr.bf16.mxu1 %v1652_v39 }
  0x36   : > { %857 = vmatprep.subr.bf16.mxu0 %v1604_v2  ;;  %v1610_v6 = vld [vmem:[%s2017_s27 + $0x84] ss:$16 sps:$4 sm:$0xff]   ;;  %v1612_v7 = vld [vmem:[%s2017_s27 + $0x80] ss:$16 sps:$4 sm:$0xff]   ;;  %v1655_v41 = vld [vmem:[%s2017_s27 + $0xcc] ss:$16 sps:$4 sm:$0xff]   ;;  %899 = vmatpush1.bf16.msra.mxu1 %v1654_v40 }
  0x37   : > { %v1613_v8 = vld [vmem:[%s2017_s27 + $0x64] ss:$16 sps:$4 sm:$0xff]   ;;  %v1615_v9 = vld [vmem:[%s2017_s27 + $0x60] ss:$16 sps:$4 sm:$0xff]   ;;  %v1657_v42 = vld [vmem:[%s2017_s27 + $0xc8] ss:$16 sps:$4 sm:$0xff]   ;;  %900 = vmatprep.subr.bf16.mxu1 %v1655_v41 }
  0x38   : > { %v1616_v10 = vld [vmem:[%s2017_s27 + $0x44] ss:$16 sps:$4 sm:$0xff]   ;;  %v1618_v11 = vld [vmem:[%s2017_s27 + $0x40] ss:$16 sps:$4 sm:$0xff]   ;;  %v1658_v43 = vld [vmem:[%s2017_s27 + $0xac] ss:$16 sps:$4 sm:$0xff]  }
  0x39   : > { %858 = vmatpush1.bf16.msra.mxu0 %v1606_v3  ;;  %v1619_v12 = vld [vmem:[%s2017_s27 + $0x24] ss:$16 sps:$4 sm:$0xff]   ;;  %v1621_v13 = vld [vmem:[%s2017_s27 + $0x20] ss:$16 sps:$4 sm:$0xff]   ;;  %v1660_v44 = vld [vmem:[%s2017_s27 + $0xa8] ss:$16 sps:$4 sm:$0xff]  }
  0x3a   : > { %859 = vmatprep.subr.bf16.mxu0 %v1607_v4  ;;  %v1622_v14 = vld [vmem:[%s2017_s27 + $0x4] ss:$16 sps:$4 sm:$0xff]   ;;  %v1624_v16 = vld [vmem:[%s2017_s27] ss:$16 sps:$4 sm:$0xff]   ;;  %901 = vmatpush1.bf16.msra.mxu1 %v1657_v42  ;;  %v1661_v45 = vld [vmem:[%s2017_s27 + $0x8c] ss:$16 sps:$4 sm:$0xff]  }
  0x3b   : > { %v1651_v15 = vld [vmem:[%s2039_s17 + $0x4] ss:$8 sps:$4 sm:$0xff]   ;;  %v1627_v18 = vld [vmem:[%s2017_s27 + $0x1e0] ss:$16 sps:$4 sm:$0xff]   ;;  %902 = vmatprep.subr.bf16.mxu1 %v1658_v43  ;;  %v1663_v46 = vld [vmem:[%s2017_s27 + $0x88] ss:$16 sps:$4 sm:$0xff]  }
  0x3c   : > { %887 = vmatprep.mubr.bf16.mxu0 %v1651_v15  ;;  %930 = vmatprep.mubr.bf16.mxu1 %v1651_v15  ;;  %v1625_v17 = vld [vmem:[%s2017_s27 + $0x1e4] ss:$16 sps:$4 sm:$0xff]   ;;  %v1630_v20 = vld [vmem:[%s2017_s27 + $0x1c0] ss:$16 sps:$4 sm:$0xff]   ;;  %v1664_v47 = vld [vmem:[%s2017_s27 + $0x6c] ss:$16 sps:$4 sm:$0xff]  }
  0x3d   : > { %860 = vmatpush1.bf16.msra.mxu0 %v1609_v5  ;;  %v1628_v19 = vld [vmem:[%s2017_s27 + $0x1c4] ss:$16 sps:$4 sm:$0xff]   ;;  %v1633_v22 = vld [vmem:[%s2017_s27 + $0x1a0] ss:$16 sps:$4 sm:$0xff]   ;;  %v1666_v48 = vld [vmem:[%s2017_s27 + $0x68] ss:$16 sps:$4 sm:$0xff]  }
  0x3e   : > { %861 = vmatprep.subr.bf16.mxu0 %v1610_v6  ;;  %v1631_v21 = vld [vmem:[%s2017_s27 + $0x1a4] ss:$16 sps:$4 sm:$0xff]   ;;  %v1636_v24 = vld [vmem:[%s2017_s27 + $0x180] ss:$16 sps:$4 sm:$0xff]   ;;  %903 = vmatpush1.bf16.msra.mxu1 %v1660_v44  ;;  %v1667_v49 = vld [vmem:[%s2017_s27 + $0x4c] ss:$16 sps:$4 sm:$0xff]  }
  0x3f   : > { %v1634_v23 = vld [vmem:[%s2017_s27 + $0x184] ss:$16 sps:$4 sm:$0xff]   ;;  %v1639_v26 = vld [vmem:[%s2017_s27 + $0x160] ss:$16 sps:$4 sm:$0xff]   ;;  %904 = vmatprep.subr.bf16.mxu1 %v1661_v45  ;;  %v1669_v50 = vld [vmem:[%s2017_s27 + $0x48] ss:$16 sps:$4 sm:$0xff]  }
  0x40   : > { %v1637_v25 = vld [vmem:[%s2017_s27 + $0x164] ss:$16 sps:$4 sm:$0xff]   ;;  %v1642_v28 = vld [vmem:[%s2017_s27 + $0x140] ss:$16 sps:$4 sm:$0xff]   ;;  %v1670_v51 = vld [vmem:[%s2017_s27 + $0x2c] ss:$16 sps:$4 sm:$0xff]  }
  0x41   : > { %862 = vmatpush1.bf16.msra.mxu0 %v1612_v7  ;;  %v1640_v27 = vld [vmem:[%s2017_s27 + $0x144] ss:$16 sps:$4 sm:$0xff]   ;;  %v1645_v30 = vld [vmem:[%s2017_s27 + $0x120] ss:$16 sps:$4 sm:$0xff]   ;;  %v1672_v52 = vld [vmem:[%s2017_s27 + $0x28] ss:$16 sps:$4 sm:$0xff]  }
  0x42   : > { %863 = vmatprep.subr.bf16.mxu0 %v1613_v8  ;;  %v1643_v29 = vld [vmem:[%s2017_s27 + $0x124] ss:$16 sps:$4 sm:$0xff]   ;;  %v1648_v32 = vld [vmem:[%s2017_s27 + $0x100] ss:$16 sps:$4 sm:$0xff]   ;;  %905 = vmatpush1.bf16.msra.mxu1 %v1663_v46  ;;  %v1673_v53 = vld [vmem:[%s2017_s27 + $0xc] ss:$16 sps:$4 sm:$0xff]  }
  0x43   : > { %v1646_v31 = vld [vmem:[%s2017_s27 + $0x104] ss:$16 sps:$4 sm:$0xff]   ;;  %v2063_v33 = vld [vmem:[%s2039_s17] ss:$8 sps:$4 sm:$0xff]   ;;  %906 = vmatprep.subr.bf16.mxu1 %v1664_v47  ;;  %v1676_v55 = vld [vmem:[%s2017_s27 + $0x1ec] ss:$16 sps:$4 sm:$0xff]  }
  0x44   : > { %v1675_v54 = vld [vmem:[%s2017_s27 + $0x8] ss:$16 sps:$4 sm:$0xff]   ;;  %v1679_v57 = vld [vmem:[%s2017_s27 + $0x1cc] ss:$16 sps:$4 sm:$0xff]   ;;  %v941_v7 = vld [vmem:[%s2267_s3] sm:$0xff]  ;;  %s2119_s0 = sshll.u32 %s437_s29, 3 }
  0x45   : > { %864 = vmatpush1.bf16.msra.mxu0 %v1615_v9  ;;  %v1678_v56 = vld [vmem:[%s2017_s27 + $0x1e8] ss:$16 sps:$4 sm:$0xff]   ;;  %v1682_v59 = vld [vmem:[%s2017_s27 + $0x1ac] ss:$16 sps:$4 sm:$0xff]   ;;  %v943_v8 = vld [vmem:[%s2268_s4] sm:$0xff]  ;;  %s439_s19 = scalar_lea.vmem %s2269_s5, %s2119_s0  ;;  %s975_s26 = sld [smem:[#allocation2 + %s1845_s13]] }
  0x46   : > { %865 = vmatprep.subr.bf16.mxu0 %v1616_v10  ;;  %907 = vmatpush1.bf16.msra.mxu1 %v1666_v48  ;;  %v1681_v58 = vld [vmem:[%s2017_s27 + $0x1c8] ss:$16 sps:$4 sm:$0xff]   ;;  %v1685_v61 = vld [vmem:[%s2017_s27 + $0x18c] ss:$16 sps:$4 sm:$0xff]   ;;  %s457_s22 = scalar_lea.vmem %s2272_s8, %s2119_s0  ;;  %s1491_s17 = sshll.u32 %s1845_s13, 1 }
  0x47   : > { %908 = vmatprep.subr.bf16.mxu1 %v1667_v49  ;;  %v1684_v60 = vld [vmem:[%s2017_s27 + $0x1a8] ss:$16 sps:$4 sm:$0xff]   ;;  %v1688_v63 = vld [vmem:[%s2017_s27 + $0x16c] ss:$16 sps:$4 sm:$0xff]  }
  0x48   : > { %v1687_v62 = vld [vmem:[%s2017_s27 + $0x188] ss:$16 sps:$4 sm:$0xff]   ;;  %v1691_v1 = vld [vmem:[%s2017_s27 + $0x14c] ss:$16 sps:$4 sm:$0xff]  }
  0x49   : > { %866 = vmatpush1.bf16.msra.mxu0 %v1618_v11  ;;  %v1690_v0 = vld [vmem:[%s2017_s27 + $0x168] ss:$16 sps:$4 sm:$0xff]   ;;  %v1694_v3 = vld [vmem:[%s2017_s27 + $0x12c] ss:$16 sps:$4 sm:$0xff]  }
  0x4a   : > { %867 = vmatprep.subr.bf16.mxu0 %v1619_v12  ;;  %909 = vmatpush1.bf16.msra.mxu1 %v1669_v50  ;;  %v1693_v2 = vld [vmem:[%s2017_s27 + $0x148] ss:$16 sps:$4 sm:$0xff]   ;;  %v1697_v5 = vld [vmem:[%s2017_s27 + $0x10c] ss:$16 sps:$4 sm:$0xff]  }
  0x4b   : > { %910 = vmatprep.subr.bf16.mxu1 %v1670_v51  ;;  %v1696_v4 = vld [vmem:[%s2017_s27 + $0x128] ss:$16 sps:$4 sm:$0xff]   ;;  %v976_v43 = vstv %s975_s26 }
  0x4c   : > { %v1699_v6 = vld [vmem:[%s2017_s27 + $0x108] ss:$16 sps:$4 sm:$0xff]   ;;  %s2140_s27 = sand.u32 1, %s1833_s10  }
  0x4d   : > { %868 = vmatpush1.bf16.msra.mxu0 %v1621_v13  ;;  %v942_v12 = vld [vmem:[%s2267_s3 + $0x8] sm:$0xff]  ;;  %s2276_s28 = sshll.u32 %s2140_s27, 4 }
  0x4e   : > { %869 = vmatprep.subr.bf16.mxu0 %v1622_v14  ;;  %911 = vmatpush1.bf16.msra.mxu1 %v1672_v52  ;;  %v944_v14 = vld [vmem:[%s2268_s4 + $0x8] sm:$0xff]  ;;  %s2145_s21 = scalar_lea.vmem [#allocation5], %s2276_s28 }
  0x4f   : > { %912 = vmatprep.subr.bf16.mxu1 %v1673_v53  ;;  %s1120_s29 = sshll.u32 %s2145_s21, 4  ;;  %s2163_s29 = int_to_ptr.vmem [resolvable:$true] %s1120_s29 }
  0x51   : > { %870 = vmatpush1.bf16.msra.mxu0 %v1624_v16 }
  0x52   : > { %871 = vmatprep.subr.bf16.mxu0 %v1625_v17  ;;  %913 = vmatpush1.bf16.msra.mxu1 %v1675_v54 }
  0x53   : > { %914 = vmatprep.subr.bf16.mxu1 %v1676_v55 }
  0x55   : > { %872 = vmatpush2.bf16.msra.mxu0 %v1627_v18 }
  0x56   : > { %873 = vmatprep.subr.bf16.mxu0 %v1628_v19  ;;  %915 = vmatpush2.bf16.msra.mxu1 %v1678_v56 }
  0x57   : > { %916 = vmatprep.subr.bf16.mxu1 %v1679_v57 }
  0x59   : > { %874 = vmatpush2.bf16.msra.mxu0 %v1630_v20 }
  0x5a   : > { %875 = vmatprep.subr.bf16.mxu0 %v1631_v21  ;;  %917 = vmatpush2.bf16.msra.mxu1 %v1681_v58 }
  0x5b   : > { %918 = vmatprep.subr.bf16.mxu1 %v1682_v59 }
  0x5d   : > { %876 = vmatpush2.bf16.msra.mxu0 %v1633_v22 }
  0x5e   : > { %877 = vmatprep.subr.bf16.mxu0 %v1634_v23  ;;  %919 = vmatpush2.bf16.msra.mxu1 %v1684_v60 }
  0x5f   : > { %920 = vmatprep.subr.bf16.mxu1 %v1685_v61 }
  0x61   : > { %878 = vmatpush2.bf16.msra.mxu0 %v1636_v24 }
  0x62   : > { %879 = vmatprep.subr.bf16.mxu0 %v1637_v25  ;;  %921 = vmatpush2.bf16.msra.mxu1 %v1687_v62 }
  0x63   : > { %922 = vmatprep.subr.bf16.mxu1 %v1688_v63 }
  0x65   : > { %880 = vmatpush2.bf16.msra.mxu0 %v1639_v26 }
  0x66   : > { %881 = vmatprep.subr.bf16.mxu0 %v1640_v27  ;;  %923 = vmatpush2.bf16.msra.mxu1 %v1690_v0 }
  0x67   : > { %924 = vmatprep.subr.bf16.mxu1 %v1691_v1 }
  0x69   : > { %882 = vmatpush2.bf16.msra.mxu0 %v1642_v28 }
  0x6a   : > { %883 = vmatprep.subr.bf16.mxu0 %v1643_v29  ;;  %925 = vmatpush2.bf16.msra.mxu1 %v1693_v2 }
  0x6b   : > { %926 = vmatprep.subr.bf16.mxu1 %v1694_v3 }
  0x6d   : > { %884 = vmatpush2.bf16.msra.mxu0 %v1645_v30 }
  0x6e   : > { %885 = vmatprep.subr.bf16.mxu0 %v1646_v31  ;;  %927 = vmatpush2.bf16.msra.mxu1 %v1696_v4 }
  0x6f   : > { %928 = vmatprep.subr.bf16.mxu1 %v1697_v5 }
  0x71   : > { %886 = vmatpush2.bf16.msra.mxu0 %v1648_v32 }
  0x72   : > { %1503 = vmatprep.subr.bf16.mxu0 %v1860_v34  ;;  %929 = vmatpush2.bf16.msra.mxu1 %v1699_v6 }
  0x74   : > { %888 = vmatmul.mubr.bf16.vlgmr.msra.gmra.mxu0 %v2063_v33 }
  0x75   : > { %1505 = vmatprep.mubr.msk.bf16.mxu0 %vm1862_vm0, %v1860_v34  ;;  %931 = vmatmul.mubr.bf16.vlgmr.msra.gmra.mxu1 %v2063_v33 }
 0x134   : > { %v2066_v35 = vpop.f32.mrf.mxu0 }
 0x135   : > { %947 = vrot.lane.b32.xlu1 %v2066_v35, %s1861_s25  ;;  %v945_v10 = vmul.f32 %v941_v7, %v2066_v35  ;;  %v932_v29 = vpop.f32.mrf.mxu1 }
 0x136   : > { %v2069_v36 = vpop.f32.mrf.mxu0  ;;  %969 = vst [vmem:[%s2145_s21] sm:$0xff] %v932_v29 }
 0x137   : > { %957 = vrot.lane.b32.xlu0 %v2069_v36, %s1861_s25  ;;  %v955_v15 = vmul.f32 %v941_v7, %v2069_v36  ;;  %v934_v30 = vpop.f32.mrf.mxu1 }
 0x138   : > { %v2072_v37 = vpop.f32.mrf.mxu0 }
 0x139   : > { %949 = vrot.lane.b32.xlu1 %v2072_v37, %s1861_s25  ;;  %v946_v19 = vmul.f32 %v942_v12, %v2072_v37  ;;  %v936_v31 = vpop.f32.mrf.mxu1 }
 0x13a   : > { %v2075_v38 = vpop.f32.mrf.mxu0  ;;  %970 = vst [vmem:[%s2145_s21 + $0x8] sm:$0xff] %v936_v31  ;;  %s1731_s21 = scalar_lea.vmem %s2163_s29, 256 }
 0x13b   : > { %959 = vrot.lane.b32.xlu0 %v2075_v38, %s1861_s25  ;;  %s448_s25 = scalar_lea.vmem %s2270_s6, %s2119_s0  ;;  %v956_v23 = vmul.f32 %v942_v12, %v2075_v38  ;;  %v938_v40 = vpop.f32.mrf.mxu1  ;;  %p1732_p10 = scmp.ne.s32.totalorder %s2163_s29, %s1731_s21 }
 0x13d   : > { %p1733_p12 = pnand %p1732_p10, %p1969_p3 }
 0x13f   : > { %p1734_p13 = pneg %p1733_p12 }
 0x1a7   : > { %v948_v9 = vpop.permute.xlu1 %947 }
 0x1a8   : > { %v951_v11 = vmul.f32 %v948_v9, %v943_v8 }
 0x1a9   : > { %v958_v13 = vpop.permute.xlu0 %957 }
 0x1aa   : > { %v953_v16 = vadd.f32 %v951_v11, %v945_v10  ;;  %v961_v17 = vmul.f32 %v958_v13, %v943_v8 }
 0x1ab   : > { %v950_v18 = vpop.permute.xlu1 %949 }
 0x1ac   : > { %965 = vst [vmem:[%s439_s19] sm:$0xff] %v953_v16  ;;  %v963_v20 = vadd.f32 %v961_v17, %v955_v15  ;;  %v952_v21 = vmul.f32 %v950_v18, %v944_v14 }
 0x1ad   : > { %v960_v22 = vpop.permute.xlu0 %959 }
 0x1ae   : > { %967 = vst [vmem:[%s448_s25] sm:$0xff] %v963_v20  ;;  %v954_v24 = vadd.f32 %v952_v21, %v946_v19  ;;  %v962_v25 = vmul.f32 %v960_v22, %v944_v14 }
 0x1b0   : > { %966 = vst [vmem:[%s439_s19 + $0x8] sm:$0xff] %v954_v24  ;;  %v996_v26 = vpack.c.bf16 %v954_v24, %v953_v16  ;;  %v964_v27 = vadd.f32 %v962_v25, %v956_v23 }
 0x1b2   : > { %968 = vst [vmem:[%s448_s25 + $0x8] sm:$0xff] %v964_v27  ;;  %v997_v28 = vpack.c.bf16 %v964_v27, %v963_v20  ;;  %s1492_s25 = sshll.u32 %s1841_s12, 2  ;;  %s1863_s12 = smov [#allocation5]  }
 0x1b3   : > { %s2161_s26 = sadd.s32 %s1492_s25, %s1491_s17  ;;  %s1735_s13 = sshll.u32 %s1863_s12, 4  ;;  %s1736_s13 = int_to_ptr.vmem [resolvable:$false] %s1735_s13 }
 0x1b4   : > { %1504 = vmatpush3.bf16.xpose.msra.mxu0 %v997_v28  ;;  %s2277_s0 = sshll.u32 %s2161_s26, 7  ;;  %s1737_s17 = scalar_lea.vmem %s1736_s13, 512 }
 0x1b5   : > { %s2171_s28 = scalar_lea.hbm %s2271_s7, %s2277_s0  ;;  %p1738_p0 = scmp.lt.s32.totalorder %s2163_s29, %s1736_s13 }
 0x1b6   : > { %p1739_p1 = scmp.lt.s32.totalorder %s1737_s17, %s1731_s21 }
 0x1b8   : > { %p1740_p2 = por %p1739_p1, %p1738_p0 }
 0x1ba   : > { %p1741_p4 = pnand %p1740_p2, %p1734_p13 }
 0x1bb   : > { %1506 = vmatmul.mubr.bf16.vlgmr.msra.gmra.mxu0 %v996_v26 }
 0x27b   : > { %v1032_v32 = vpop.f32.mrf.mxu0 }
 0x27c   : > { %v1039_v33 = vmul.f32 0.088388346, %v1032_v32 }
 0x27d   : > { %v1507_v34 = vpop.f32.mrf.mxu0 }
 0x27e   : > { %v1042_v35 = vsel %vm1041_vm1, %v1039_v33, -inf }
 0x27f   : > { %1043 = vmax.xlane.f32.xlu0 %v1042_v35  ;;  %v1035_v36 = vpop.f32.mrf.mxu0 }
 0x280   : > { %v1040_v37 = vmul.f32 0.088388346, %v1035_v36 }
 0x281   : > { %v1508_v38 = vpop.f32.mrf.mxu0 }
 0x282   : > { %v1045_v39 = vsel %vm1041_vm1, %v1040_v37, -inf }
 0x283   : > { %1046 = vmax.xlane.f32.xlu1 %v1045_v39  ;;  %971 = vadd.xlane.f32.xlu0 %v934_v30 }
 0x287   : > { %973 = vadd.xlane.f32.xlu0 %v938_v40 }
 0x308   : > { %v1044_v41 = vpop.xlane.xlu0 %1043 }
 0x309   : > { %v1048_v42 = vsub.f32 %v1039_v33, %v1044_v41 }
 0x30b   : > { %v1050_v44 = vmul.f32 1.442695, %v1048_v42 }
 0x30c   : > { %v1047_v45 = vpop.xlane.xlu1 %1046  ;;  %v972_v46 = vpop.xlane.xlu0 %971 }
 0x30d   : > { %1700 = vpow2.f32 %v1050_v44  ;;  %v1049_v47 = vsub.f32 %v1040_v37, %v1047_v45  ;;  %v977_v48 = vadd.f32 %v976_v43, %v972_v46 }
 0x30f   : > { %v1052_v49 = vmul.f32 1.442695, %v1049_v47  ;;  %v1487_v50 = vmul.f32 -1.442695, %v977_v48 }
 0x310   : > { %v974_v51 = vpop.xlane.xlu0 %973 }
 0x311   : > { %1702 = vpow2.f32 %v1052_v49  ;;  %v978_v52 = vadd.f32 %v976_v43, %v974_v51 }
 0x312   : > { %1704 = vpow2.f32 %v1487_v50 }
 0x313   : > { %v1488_v53 = vmul.f32 -1.442695, %v978_v52 }
 0x315   : > { %1706 = vpow2.f32 %v1488_v53 }
 0x31a   : > { %v1701_v54 = vpop.eup %1700 }
 0x31b   : > { %v1054_v55 = vsel %vm1041_vm1, %v1701_v54, 0.0 }
 0x31c   : > { %1055 = vadd.xlane.f32.xlu1 %v1054_v55 }
 0x31e   : > { %v1703_v56 = vpop.eup %1702 }
 0x31f   : > { %v1705_v57 = vpop.eup %1704  ;;  %v1057_v58 = vsel %vm1041_vm1, %v1703_v56, 0.0 }
 0x320   : > { %1058 = vadd.xlane.f32.xlu0 %v1057_v58  ;;  %v985_v59 = vadd.f32 1.0, %v1705_v57 }
 0x322   : > { %v1707_v60 = vpop.eup %1706  ;;  %1708 = vrcp.f32 %v985_v59 }
 0x323   : > { %v986_v61 = vadd.f32 1.0, %v1707_v60 }
 0x325   : > { %1710 = vrcp.f32 %v986_v61 }
 0x32f   : > { %v1709_v62 = vpop.eup %1708 }
 0x330   : > { %v991_v63 = vmul.f32 0.0078125, %v1709_v62 }
 0x332   : > { %v1711_v0 = vpop.eup %1710  ;;  %994 = vst.msk [vmem:[%s457_s22] sm:$0xff] %vm993_vm2, %v991_v63 }
 0x333   : > { %v992_v1 = vmul.f32 0.0078125, %v1711_v0 }
 0x335   : > { %995 = vst.msk [vmem:[%s457_s22 + $0x8] sm:$0xff] %vm993_vm2, %v992_v1 }
 0x336   : > { %1744 = shalt.err (!%p1741_p4)
}
 0x337   : > { %s1745_s25 = scalar_lea.hbm %s2171_s28, 256  ;;  %s1749_s12 = scalar_lea.hbm %s2271_s7, 1024 }
 0x338   : > { %p1746_p5 = scmp.ne.s32.totalorder %s2171_s28, %s1745_s25  ;;  %p1750_p9 = scmp.lt.s32.totalorder %s2171_s28, %s2271_s7 }
 0x339   : > { %p1751_p11 = scmp.lt.s32.totalorder %s1749_s12, %s1745_s25 }
 0x33a   : > { %p1747_p6 = pnand %p1746_p5, %p1969_p3 }
 0x33b   : > { %p1752_p8 = por %p1751_p11, %p1750_p9 }
 0x33c   : > { %p1748_p7 = pneg %p1747_p6 }
 0x33e   : > { %p1753_p10 = pnand %p1752_p8, %p1748_p7 }
 0x340   : > { %1756 = shalt.err (!%p1753_p10)
}
 0x341   : > { %s2278_s21 = smov 128   ;;  %s2279_s13 = smov 8  }
 0x342   : > { %s2288_s17 = scalar_lea.sflag [#allocation3], %s2140_s27  ;;  %s2289_s0 = sshll.u32 %s2140_s27, 4 }
 0x343   : > { %1513 = dma.vmem_to_hbm [thread:$0]  (%p1969_p3), %s2163_s29, 256, %s2171_s28, %s2288_s17, %s2278_s21, %s2278_s21, %s2279_s13  }
 0x344   : > { %s420_s22 = scalar_lea.vmem [#allocation6], %s2289_s0  ;;  %s2290_s28 = sshll.u32 %s2161_s26, 7 }
 0x345   : > { %s1141_s25 = sshll.u32 %s420_s22, 4  ;;  %s2209_s18 = scalar_lea.hbm %s2273_s9, %s2290_s28  ;;  %s2202_s25 = int_to_ptr.vmem [resolvable:$true] %s1141_s25 }
 0x346   : > { %s1099_s12 = scalar_lea.sflag [#allocation7], %s2140_s27  ;;  %s1757_s17 = scalar_lea.vmem %s2202_s25, 256 }
 0x347   : > { %p1758_p12 = scmp.ne.s32.totalorder %s2202_s25, %s1757_s17  ;;  %s1866_s0 = smov [#allocation6]  }
 0x348   : > { %s1761_s21 = sshll.u32 %s1866_s0, 4  ;;  %s1762_s21 = int_to_ptr.vmem [resolvable:$false] %s1761_s21 }
 0x349   : > { %p1759_p13 = pnand %p1758_p12, %p1969_p3  ;;  %s1763_s13 = scalar_lea.vmem %s1762_s21, 512 }
 0x34a   : > { %p1764_p1 = scmp.lt.s32.totalorder %s2202_s25, %s1762_s21  ;;  %p1765_p2 = scmp.lt.s32.totalorder %s1763_s13, %s1757_s17 }
 0x34b   : > { %p1760_p0 = pneg %p1759_p13 }
 0x34c   : > { %p1766_p4 = por %p1765_p2, %p1764_p1 }
 0x34e   : > { %p1767_p5 = pnand %p1766_p4, %p1760_p0 }
 0x3a5   : > { %v1056_v2 = vpop.xlane.xlu1 %1055 }
 0x3a6   : > { %1712 = vrcp.f32 %v1056_v2 }
 0x3a9   : > { %v1059_v3 = vpop.xlane.xlu0 %1058 }
 0x3aa   : > { %1714 = vrcp.f32 %v1059_v3 }
 0x3b3   : > { %v1713_v4 = vpop.eup %1712 }
 0x3b4   : > { %v1062_v5 = vmul.f32 %v1713_v4, %v1701_v54 }
 0x3b6   : > { %1064 = vst.msk [vmem:[%s420_s22] sm:$0xff] %vm1041_vm1, %v1062_v5 }
 0x3b7   : > { %v1715_v6 = vpop.eup %1714 }
 0x3b8   : > { %v1063_v7 = vmul.f32 %v1715_v6, %v1703_v56 }
 0x3ba   : > { %1065 = vst.msk [vmem:[%s420_s22 + $0x8] sm:$0xff] %vm1041_vm1, %v1063_v7 }
 0x3bb   : > { %1770 = shalt.err (!%p1767_p5)
}
 0x3bc   : > { %s1771_s26 = scalar_lea.hbm %s2209_s18, 256  ;;  %s1775_s28 = scalar_lea.hbm %s2273_s9, 1024 }
 0x3bd   : > { %p1772_p6 = scmp.ne.s32.totalorder %s2209_s18, %s1771_s26  ;;  %p1776_p11 = scmp.lt.s32.totalorder %s2209_s18, %s2273_s9 }
 0x3be   : > { %p1777_p8 = scmp.lt.s32.totalorder %s1775_s28, %s1771_s26 }
 0x3bf   : > { %p1773_p7 = pnand %p1772_p6, %p1969_p3 }
 0x3c0   : > { %p1778_p10 = por %p1777_p8, %p1776_p11 }
 0x3c1   : > { %p1774_p9 = pneg %p1773_p7 }
 0x3c3   : > { %p1779_p12 = pnand %p1778_p10, %p1774_p9 }
 0x3c5   : > { %1782 = shalt.err (!%p1779_p12)
}
 0x3c6   : > { %s2291_s21 = smov 8   ;;  %s2292_s13 = smov 128  }
 0x3c7   : > { %1514 = dma.vmem_to_hbm [thread:$0]  (%p1969_p3), %s2202_s25, 256, %s2209_s18, %s1099_s12, %s2292_s13, %s2292_s13, %s2291_s21  }
 0x3c8 PF: > { %p1530_p13 = scmp.ge.s32.totalorder %s1857_s16, 2  ;;  %s1180_s17 = sand.u32 1, %s1829_s30  }
 0x3c9   : > { %p2293_p0 = scmp.ne.s32.totalorder %s2284_s24, 0  ;;  %s1181_s0 = scalar_lea.sflag [#allocation3], %s1180_s17 }
 0x3cb   : > { %p1522_p1 = pnand %p1530_p13, %p2293_p0 }
 0x3cd   : > { %p1523_p2 = pneg %p1522_p1 }
 0x3cf   : > { %1820 = dma.done.wait (%p1523_p2), %s1181_s0, 256  }
 0x3d0   : > { %1822 = vsyncadd (%p1523_p2), %s1181_s0, 4294967040  ;;  %s1202_s26 = scalar_lea.sflag [#allocation7], %s1180_s17 }
 0x3d1   : > { %1824 = dma.done.wait (%p1523_p2), %s1202_s26, 256  }
 0x3d2   : > { %1826 = vsyncadd (%p1523_p2), %s1202_s26, 4294967040  ;;  %s27_s16 = sadd.s32 1, %s1857_s16   ;;  %s2294_s12 = sld [smem:[#allocation11_spill]] }
 0x3d3   : > { %p24_p4 = scmp.ge.s32.totalorder %s27_s16, 6   ;;  %s2295_s23 = sld [smem:[#allocation12_spill]] }
 0x3d4   : > { %s2296_s30 = smov %s1833_s10  ;;  %s2297_s10 = smov %s1837_s11 }
 0x3d5   : > { %s2298_s11 = smov %s1999_s14  ;;  %s2299_s13 = smov %s1853_s15 }
 0x3d6   : > { %s2301_s15 = smov %s2307_s20  ;;  %26 = sbr.rel (!%p24_p4) target bundleno = 10 (0xa), region = 136 }
 0x3d9   : > { %s2300_s14 = smov %s2295_s23 }
 0x3db   :  { %1207 = vsyncpa [#allocation3], 1 }
 0x3dc   :  { %1209 = vsyncpa [#allocation3 + $0x1], 1 }
 0x3dd   :  { %1210 = vsyncpa [#allocation7], 1 }
 0x3de   :  { %1212 = vsyncpa [#allocation7 + $0x1], 1 }
 0x3df   :  { %1213 = vsyncpa [#allocation4], 1 }
 0x3e0   :  { %1215 = vsyncpa [#allocation4 + $0x1], 1 }

</bundles_post_ra>
